<compile_context>
chip_gen: v7x
topology: tpu7x:2x2x1
jax: 0.10.0
libtpu: 0.0.40
codegen_flags: <defaults>
</compile_context>

<pallas_src>
import functools

import jax
import jax.numpy as jnp
from jax.experimental import pallas as pl
from jax.experimental.pallas import tpu as pltpu


# ---------------------------------------------------------------------------
# Kernels
# ---------------------------------------------------------------------------

def _selfexpr_single_block_kernel(w_ref, x_ref, o_ref, *, use_bf16_matmul):
    """Whole problem resident in VMEM: one masked matmul, no grid."""
    w = w_ref[...]
    row = jax.lax.broadcasted_iota(jnp.int32, w.shape, 0)
    col = jax.lax.broadcasted_iota(jnp.int32, w.shape, 1)
    w = jnp.where(row == col, jnp.zeros_like(w), w)
    x = x_ref[...]
    if use_bf16_matmul:
        w = w.astype(jnp.bfloat16)
        x = x.astype(jnp.bfloat16)
    o_ref[...] = jnp.dot(w, x, preferred_element_type=jnp.float32).astype(o_ref.dtype)


def _selfexpr_tiled_kernel(w_ref, x_ref, o_ref, *, use_bf16_matmul):
    """Tiled matmul with the diagonal of W zeroed only on the i == k block.

    Grid: (n//tm, d//tn, n//tk)  ->  (row-tile i, col-tile j, reduce-tile k).
    Requires tm == tk so the diagonal block is exactly the i == k tile.
    Accumulates in f32 directly into the (k-resident) output block.
    """
    i = pl.program_id(0)
    k = pl.program_id(2)

    @pl.when(k == 0)
    def _():
        o_ref[...] = jnp.zeros_like(o_ref)

    def _dot(w):
        x = x_ref[...]
        if use_bf16_matmul:
            w = w.astype(jnp.bfloat16)
            x = x.astype(jnp.bfloat16)
        return jnp.dot(w, x, preferred_element_type=jnp.float32)

    # Steady state: pure MXU push, no mask work on the VPU.
    @pl.when(i != k)
    def _():
        o_ref[...] += _dot(w_ref[...])

    # Diagonal block only: zero the tile-local diagonal (tm == tk, so the
    # global row/col offsets cancel and a tile-local iota mask is exact).
    @pl.when(i == k)
    def _():
        tm, tk = w_ref.shape
        r = jax.lax.broadcasted_iota(jnp.int32, (tm, tk), 0)
        c = jax.lax.broadcasted_iota(jnp.int32, (tm, tk), 1)
        w = jnp.where(r == c, jnp.zeros_like(w_ref[...]), w_ref[...])
        o_ref[...] += _dot(w)


# ---------------------------------------------------------------------------
# Tile selection
# ---------------------------------------------------------------------------

_TILE_CANDIDATES = (512, 256, 128)


def _pick_row_tile(n):
    # Prefer keeping >= 2 blocks along the parallel row axis (v7x has 2 TCs).
    for t in _TILE_CANDIDATES:
        if n % t == 0 and n // t >= 2:
            return t
    for t in _TILE_CANDIDATES:
        if n % t == 0:
            return t
    raise ValueError(f"n={n} must be a multiple of 128 for the tiled SelfExpr kernel")


def _pick_col_tile(d):
    # tn = d when it fits comfortably: the j-grid collapses and W streams once.
    if d % 128 == 0 and d <= 1024:
        return d
    for t in _TILE_CANDIDATES:
        if d % t == 0:
            return t
    raise ValueError(f"d={d} must be a multiple of 128 for the tiled SelfExpr kernel")


# ---------------------------------------------------------------------------
# Forward wrapper (matches SelfExpr.forward: returns (weight, output))
# ---------------------------------------------------------------------------

def self_expr_forward(weight, x, *, use_bf16_matmul=False, force_tiled=False,
                      single_block_byte_limit=4 * 1024 * 1024):
    """Returns (weight, (weight - diag(diag(weight))) @ x)."""
    n, n2 = weight.shape
    assert n == n2, "weight must be square"
    n_x, d = x.shape
    assert n_x == n, "input first dim must equal n"

    out_dtype = jnp.promote_types(weight.dtype, x.dtype)

    # --- Fast path: everything fits in VMEM, run a single un-gridded kernel.
    total_bytes = (n * n + 2 * n * d) * jnp.dtype(out_dtype).itemsize
    if not force_tiled and total_bytes <= single_block_byte_limit:
        out = pl.pallas_call(
            functools.partial(_selfexpr_single_block_kernel,
                              use_bf16_matmul=use_bf16_matmul),
            out_shape=jax.ShapeDtypeStruct((n, d), out_dtype),
        )(weight, x)
        return weight, out

    # --- Tiled path.
    assert out_dtype == jnp.float32, "tiled path accumulates directly into a f32 output"
    tm = _pick_row_tile(n)
    tk = tm                      # required for the i == k diagonal gate
    tn = _pick_col_tile(d)
    assert n % tm == 0 and n % tk == 0 and d % tn == 0

    grid = (n // tm, d // tn, n // tk)

    # Double-buffered W + x + out tiles, in f32, plus headroom.
    vmem_est = 2 * (tm * tk + tk * tn + tm * tn) * 4
    vmem_limit = min(max(2 * vmem_est, 32 * 1024 * 1024), 48 * 1024 * 1024)

    out = pl.pallas_call(
        functools.partial(_selfexpr_tiled_kernel, use_bf16_matmul=use_bf16_matmul),
        out_shape=jax.ShapeDtypeStruct((n, d), out_dtype),
        grid_spec=pltpu.PrefetchScalarGridSpec(
            num_scalar_prefetch=0,
            grid=grid,
            in_specs=[
                pl.BlockSpec((tm, tk), lambda i, j, k: (i, k)),  # W tile
                pl.BlockSpec((tk, tn), lambda i, j, k: (k, j)),  # x tile
            ],
            out_specs=pl.BlockSpec((tm, tn), lambda i, j, k: (i, j)),
        ),
        compiler_params=pltpu.CompilerParams(
            dimension_semantics=("parallel", "parallel", "arbitrary"),
            vmem_limit_bytes=int(vmem_limit),
        ),
    )(weight, x)

    # PyTorch returns the raw Parameter unchanged as the first output.
    return weight, out


# ---------------------------------------------------------------------------
# Self-test
# ---------------------------------------------------------------------------

if __name__ == "__main__":
    key = jax.random.PRNGKey(0)
    k_w, k_x, k_w2, k_x2 = jax.random.split(key, 4)

    # 1) Small problem (matches the module's typical use): single-block path.
    n, d = 256, 128
    weight = jax.random.uniform(k_w, (n, n), dtype=jnp.float32,
                                minval=0.0, maxval=0.01)
    x = jax.random.normal(k_x, (n, d), dtype=jnp.float32)

    w_out, y = self_expr_forward(weight, x)
    jax.block_until_ready((w_out, y))

    y_ref = (weight - jnp.diag(jnp.diagonal(weight))) @ x
    assert jnp.allclose(y, y_ref, atol=1e-4, rtol=1e-4), "single-block mismatch"
    assert jnp.array_equal(w_out, weight)

    # 2) Exercise the tiled path too (forced), still small: grid (2, 1, 2).
    n2, d2 = 512, 256
    weight2 = jax.random.uniform(k_w2, (n2, n2), dtype=jnp.float32,
                                 minval=0.0, maxval=0.01)
    x2 = jax.random.normal(k_x2, (n2, d2), dtype=jnp.float32)

    _, y2 = self_expr_forward(weight2, x2, force_tiled=True)
    jax.block_until_ready(y2)

    y2_ref = (weight2 - jnp.diag(jnp.diagonal(weight2))) @ x2
    assert jnp.allclose(y2, y2_ref, atol=1e-4, rtol=1e-4), "tiled mismatch"

    print("KERNEL_OK")
</pallas_src>

<mosaic_0001>
module attributes {stable_mosaic.version = 11 : i64} {
  func.func @_selfexpr_single_block_kernel(%arg0: memref<256x256xf32, #tpu.memory_space<vmem>>, %arg1: memref<256x128xf32, #tpu.memory_space<vmem>>, %arg2: memref<256x128xf32, #tpu.memory_space<vmem>>) attributes {dimension_semantics = [], scalar_prefetch = 0 : i64, scratch_operands = 0 : i64, tpu.core_type = #tpu.core_type<tc>} {
    %c0 = arith.constant 0 : index
    %c0_0 = arith.constant 0 : index
    %0 = vector.load %arg0[%c0, %c0_0] : memref<256x256xf32, #tpu.memory_space<vmem>>, vector<256x256xf32>
    %1 = tpu.iota {dimensions = array<i32: 0>} : vector<256x256xi32>
    %2 = tpu.iota {dimensions = array<i32: 1>} : vector<256x256xi32>
    %3 = arith.cmpi eq, %1, %2 : vector<256x256xi32>
    %cst = arith.constant 0.000000e+00 : f32
    %4 = vector.broadcast %cst : f32 to vector<256x256xf32>
    %5 = arith.select %3, %4, %0 : vector<256x256xi1>, vector<256x256xf32>
    %c0_1 = arith.constant 0 : index
    %c0_2 = arith.constant 0 : index
    %6 = vector.load %arg1[%c0_1, %c0_2] : memref<256x128xf32, #tpu.memory_space<vmem>>, vector<256x128xf32>
    %cst_3 = arith.constant dense<0.000000e+00> : vector<256x128xf32>
    %7 = tpu.matmul %5, %6, %cst_3 {dimension_numbers = #tpu.dot_dimension_numbers<[1], [0], [0], [1], [0, 0, 1, 1], [], []>} : vector<256x256xf32>, vector<256x128xf32>, vector<256x128xf32> -> vector<256x128xf32>
    %c0_4 = arith.constant 0 : index
    %c0_5 = arith.constant 0 : index
    %8 = vector.load %arg2[%c0_4, %c0_5] : memref<256x128xf32, #tpu.memory_space<vmem>>, vector<256x128xf32>
    tpu.vector_store %arg2[%c0_4, %c0_5], %7 {strides = array<i32>} : memref<256x128xf32, #tpu.memory_space<vmem>>, vector<256x128xf32>,
    return
  }
}

</mosaic_0001>

<bundles_post_ra>
// kernel: tpu_custom_call.1
= control target key start
LH: loop header
LB: loop body
LE: loop exit
PB: predicated region body
PF: predicated region fallthrough
CT: control target
= control target key end

     0   :  { %7 = vsyncpa [#allocation3], 0  ;;  %s1151_s0 = inlined_call_operand.hbm [shape: f32[256,256], index: 0, kind: input, shape index: {}]   ;;  %s1152_s1 = inlined_call_operand.hbm [shape: f32[256,128], index: 1, kind: input, shape index: {}]   ;;  %s1153_s2 = inlined_call_operand.hbm [shape: f32[256,128], index: 2, kind: output, shape index: {}]  }
   0x1   :  { %8 = vsyncpa [#allocation6], 0 }
   0x2   :  { %9 = vsyncpa [#allocation4], 0  ;;  %s831_s9 = smov [#allocation2]   ;;  %s759_s13 = scalar_lea.hbm %s1151_s0, 8192 }
   0x3   :  { %s15_s10 = sshll.u32 %s831_s9, 4  ;;  %p760_p0 = scmp.ne.s32.totalorder %s1151_s0, %s759_s13  ;;  %s16_s10 = int_to_ptr.vmem [resolvable:$true] %s15_s10 }
   0x4   :  { %p763_p1 = scmp.lt.u32.totalorder %s759_s13, %s1151_s0 }
   0x6   :  { %p765_p2 = pnand %p763_p1, %p760_p0 }
   0x8   :  { %768 = shalt.err (!%p765_p2)
}
   0x9   :  { %s769_s18 = scalar_lea.vmem %s16_s10, 8192  ;;  %p774_p4 = scmp.lt.s32.totalorder %s16_s10, %s16_s10 }
   0xa   :  { %p770_p3 = scmp.ne.s32.totalorder %s16_s10, %s769_s18  ;;  %p775_p5 = scmp.lt.s32.totalorder %s769_s18, %s769_s18 }
   0xc   :  { %p776_p6 = por %p775_p5, %p774_p4 }
   0xe   :  { %p777_p7 = pnand %p776_p6, %p770_p3 }
  0x10   :  { %780 = shalt.err (!%p777_p7)
}
  0x11   :  { %s832_s19 = smov 256   ;;  %s833_s20 = smov 16  }
  0x12   :  { %21 = dma.hbm_to_vmem [thread:$0]  %s1151_s0, 8192, %s16_s10, [#allocation3], %s832_s19, %s832_s19, %s833_s20  }
  0x13   :  { %s834_s23 = smov [#allocation5]   ;;  %s781_s27 = scalar_lea.hbm %s1152_s1, 4096 }
  0x14   :  { %s27_s24 = sshll.u32 %s834_s23, 4  ;;  %p782_p8 = scmp.ne.s32.totalorder %s1152_s1, %s781_s27  ;;  %s28_s24 = int_to_ptr.vmem [resolvable:$true] %s27_s24 }
  0x15   :  { %p785_p9 = scmp.lt.u32.totalorder %s781_s27, %s1152_s1 }
  0x17   :  { %p787_p10 = pnand %p785_p9, %p782_p8 }
  0x19   :  { %790 = shalt.err (!%p787_p10)
}
  0x1a   :  { %s791_s4 = scalar_lea.vmem %s28_s24, 4096  ;;  %p796_p12 = scmp.lt.s32.totalorder %s28_s24, %s28_s24 }
  0x1b   :  { %p792_p11 = scmp.ne.s32.totalorder %s28_s24, %s791_s4  ;;  %p797_p13 = scmp.lt.s32.totalorder %s791_s4, %s791_s4 }
  0x1d   :  { %p798_p0 = por %p797_p13, %p796_p12 }
  0x1f   :  { %p799_p1 = pnand %p798_p0, %p792_p11 }
  0x21   :  { %802 = shalt.err (!%p799_p1)
}
  0x22   :  { %s835_s0 = smov 128   ;;  %s836_s5 = smov 8  }
  0x23   :  { %33 = dma.hbm_to_vmem [thread:$0]  %s1152_s1, 4096, %s28_s24, [#allocation6], %s835_s0, %s835_s0, %s836_s5  }
  0x24   :  { %825 = dma.done.wait [#allocation3], 8192  }
  0x25   :  { %826 = vsyncadd [#allocation3], 4294959104 }
  0x26   :  { %827 = dma.done.wait [#allocation6], 4096  }
  0x27   :  { %828 = vsyncadd [#allocation6], 4294963200  ;;  %v104_v0 = vlaneseq  ;;  %v837_v1 = vmov 0.0|0.0   ;;  %v268_v7 = vld [vmem:[#allocation5] sm:$0xff]  ;;  %v269_v8 = vld [vmem:[#allocation5 + $0x8] sm:$0xff]  ;;  %s838_s1 = smov [#allocation7]  }
  0x28   :  { %671 = vmatprep.subr.bf16.mxu0 %v837_v1  ;;  %719 = vmatprep.subr.bf16.mxu1 %v837_v1  ;;  %v270_v9 = vld [vmem:[#allocation5 + $0x10] sm:$0xff]  ;;  %v672_v10 = vpack.c.bf16 %v269_v8, %v268_v7  ;;  %v271_v11 = vld [vmem:[#allocation5 + $0x18] sm:$0xff]  ;;  %v272_v18 = vld [vmem:[#allocation5 + $0x20] sm:$0xff]  ;;  %s562_s8 = sshll.u32 %s838_s1, 4  ;;  %s563_s8 = int_to_ptr.vmem [resolvable:$true] %s562_s8 }
  0x29   :  { %v883_v2 = vand.u32 127, %v104_v0  ;;  %v885_v3 = vshrl.u32 %v104_v0, 7  ;;  %v675_v15 = vpack.c.bf16 %v271_v11, %v270_v9  ;;  %v273_v19 = vld [vmem:[#allocation5 + $0x28] sm:$0xff]  ;;  %v274_v24 = vld [vmem:[#allocation5 + $0x30] sm:$0xff]  ;;  %v275_v25 = vld [vmem:[#allocation5 + $0x38] sm:$0xff]  ;;  %s803_s9 = scalar_lea.vmem %s563_s8, 4096  ;;  %p808_p3 = scmp.lt.s32.totalorder %s563_s8, %s563_s8 }
  0x2a   :  { %673 = vmatpush1.bf16.msra.mxu0 %v672_v10  ;;  %735 = vmatpush1.bf16.msra.mxu1 %v672_v10  ;;  %v678_v23 = vpack.c.bf16 %v273_v19, %v272_v18  ;;  %v276_v29 = vld [vmem:[#allocation5 + $0x40] sm:$0xff]  ;;  %v277_v30 = vld [vmem:[#allocation5 + $0x48] sm:$0xff]  ;;  %v681_v32 = vpack.c.bf16 %v275_v25, %v274_v24  ;;  %v278_v48 = vld [vmem:[#allocation5 + $0x50] sm:$0xff]  ;;  %p804_p2 = scmp.ne.s32.totalorder %s563_s8, %s803_s9  ;;  %p809_p4 = scmp.lt.s32.totalorder %s803_s9, %s803_s9 }
  0x2b   :  { %v888_v4 = vadd.s32 128, %v883_v2  ;;  %v891_v5 = vadd.s32 24, %v885_v3  ;;  %v894_v6 = vadd.s32 160, %v885_v3  ;;  %v901_v12 = vadd.s32 32, %v885_v3  ;;  %674 = vmatprep.subr.bf16.mxu0 %v837_v1  ;;  %720 = vmatprep.subr.bf16.mxu1 %v837_v1  ;;  %v41_v33 = vld [vmem:[#allocation2 + $0x8] sm:$0xff]  ;;  %v279_v49 = vld [vmem:[#allocation5 + $0x58] sm:$0xff] }
  0x2c   :  { %v904_v13 = vadd.s32 168, %v885_v3  ;;  %v907_v14 = vadd.s32 40, %v885_v3  ;;  %v912_v16 = vadd.s32 176, %v885_v3  ;;  %v915_v17 = vadd.s32 48, %v885_v3  ;;  %v73_v36 = vld [vmem:[#allocation2 + $0x108] sm:$0xff]  ;;  %364 = vmatprep.mubr.f32.mxu0 %v41_v33  ;;  %v280_v51 = vld [vmem:[#allocation5 + $0x60] sm:$0xff]  ;;  %p810_p5 = por %p809_p4, %p808_p3 }
  0x2d   :  { %vm642_vm0 = vcmp.ne.s32.totalorder %v891_v5, %v883_v2  ;;  %vm659_vm1 = vcmp.ne.s32.totalorder %v894_v6, %v888_v4  ;;  %vm643_vm2 = vcmp.ne.s32.totalorder %v901_v12, %v883_v2  ;;  %v922_v20 = vadd.s32 184, %v885_v3  ;;  %v281_v52 = vld [vmem:[#allocation5 + $0x68] sm:$0xff]  ;;  %v282_v54 = vld [vmem:[#allocation5 + $0x70] sm:$0xff]  ;;  %v283_v55 = vld [vmem:[#allocation5 + $0x78] sm:$0xff] }
  0x2e   :  { %vm660_vm3 = vcmp.ne.s32.totalorder %v904_v13, %v888_v4  ;;  %vm644_vm4 = vcmp.ne.s32.totalorder %v907_v14, %v883_v2  ;;  %vm661_vm5 = vcmp.ne.s32.totalorder %v912_v16, %v888_v4  ;;  %vm645_vm6 = vcmp.ne.s32.totalorder %v915_v17, %v883_v2  ;;  %676 = vmatpush1.bf16.msra.mxu0 %v675_v15  ;;  %v284_v57 = vld [vmem:[#allocation5 + $0x80] sm:$0xff]  ;;  %v285_v58 = vld [vmem:[#allocation5 + $0x88] sm:$0xff]  ;;  %v286_v60 = vld [vmem:[#allocation5 + $0x90] sm:$0xff]  ;;  %p811_p6 = pnand %p810_p5, %p804_p2 }
  0x2f   :  { %v121_v21 = vadd.s32 128, %v885_v3  ;;  %vm662_vm7 = vcmp.ne.s32.totalorder %v922_v20, %v888_v4  ;;  %v934_v22 = vadd.s32 56, %v885_v3  ;;  %736 = vmatpush1.bf16.msra.mxu1 %v675_v15  ;;  %v937_v26 = vadd.s32 192, %v885_v3  ;;  %677 = vmatprep.subr.bf16.mxu0 %v837_v1  ;;  %v287_v61 = vld [vmem:[#allocation5 + $0x98] sm:$0xff]  ;;  %v288_v63 = vld [vmem:[#allocation5 + $0xa0] sm:$0xff]  ;;  %v289_v0 = vld [vmem:[#allocation5 + $0xa8] sm:$0xff] }
  0x30   :  { %v940_v27 = vadd.s32 64, %v885_v3  ;;  %v943_v28 = vadd.s32 200, %v885_v3  ;;  %721 = vmatprep.subr.bf16.mxu1 %v837_v1  ;;  %v950_v31 = vadd.s32 72, %v885_v3  ;;  %v962_v34 = vadd.s32 208, %v885_v3  ;;  %v290_v8 = vld [vmem:[#allocation5 + $0xb0] sm:$0xff]  ;;  %v291_v9 = vld [vmem:[#allocation5 + $0xb8] sm:$0xff] }
  0x31   :  { %vm646_vm8 = vcmp.ne.s32.totalorder %v934_v22, %v883_v2  ;;  %vm663_vm9 = vcmp.ne.s32.totalorder %v937_v26, %v888_v4  ;;  %vm655_vm12 = vcmp.ne.s32.totalorder %v121_v21, %v888_v4  ;;  %v684_v35 = vpack.c.bf16 %v277_v30, %v276_v29  ;;  %v292_v11 = vld [vmem:[#allocation5 + $0xc0] sm:$0xff]  ;;  %v293_v15 = vld [vmem:[#allocation5 + $0xc8] sm:$0xff]  ;;  %v294_v19 = vld [vmem:[#allocation5 + $0xd0] sm:$0xff] }
  0x32   :  { %679 = vmatpush1.bf16.msra.mxu0 %v678_v23  ;;  %v965_v37 = vadd.s32 80, %v885_v3  ;;  %v968_v38 = vadd.s32 216, %v885_v3  ;;  %v971_v39 = vadd.s32 88, %v885_v3  ;;  %v978_v40 = vadd.s32 224, %v885_v3  ;;  %608 = vmatprep.mubr.msk.f32.mxu1 %vm655_vm12, %v73_v36  ;;  %v295_v21 = vld [vmem:[#allocation5 + $0xd8] sm:$0xff]  ;;  %v296_v24 = vld [vmem:[#allocation5 + $0xe0] sm:$0xff] }
  0x33   :  { %737 = vmatpush1.bf16.msra.mxu1 %v678_v23  ;;  %680 = vmatprep.subr.bf16.mxu0 %v837_v1  ;;  %v981_v41 = vadd.s32 96, %v885_v3  ;;  %v984_v42 = vadd.s32 232, %v885_v3  ;;  %v995_v43 = vadd.s32 104, %v885_v3  ;;  %v1004_v44 = vadd.s32 240, %v885_v3  ;;  %v297_v25 = vld [vmem:[#allocation5 + $0xe8] sm:$0xff]  ;;  %v298_v30 = vld [vmem:[#allocation5 + $0xf0] sm:$0xff] }
  0x34   :  { %722 = vmatprep.subr.bf16.mxu1 %v837_v1  ;;  %vm649_vm15 = vcmp.ne.s32.totalorder %v965_v37, %v883_v2  ;;  %vm666_vm13 = vcmp.ne.s32.totalorder %v968_v38, %v888_v4  ;;  %v1009_v45 = vadd.s32 112, %v885_v3  ;;  %v1012_v46 = vadd.s32 248, %v885_v3  ;;  %v40_v36 = vld [vmem:[#allocation2] sm:$0xff]  ;;  %v50_v5 = vld [vmem:[#allocation2 + $0x50] sm:$0xff] }
  0x35   :  { %v1015_v47 = vadd.s32 120, %v885_v3  ;;  %v687_v50 = vpack.c.bf16 %v279_v49, %v278_v48  ;;  %v690_v53 = vpack.c.bf16 %v281_v52, %v280_v51  ;;  %v693_v56 = vpack.c.bf16 %v283_v55, %v282_v54  ;;  %v72_v48 = vld [vmem:[#allocation2 + $0x100] sm:$0xff]  ;;  %v75_v51 = vld [vmem:[#allocation2 + $0x118] sm:$0xff]  ;;  %v45_v55 = vld [vmem:[#allocation2 + $0x28] sm:$0xff] }
  0x36   :  { %682 = vmatpush1.bf16.msra.mxu0 %v681_v32  ;;  %v696_v59 = vpack.c.bf16 %v285_v58, %v284_v57  ;;  %v699_v62 = vpack.c.bf16 %v287_v61, %v286_v60  ;;  %v702_v7 = vpack.c.bf16 %v289_v0, %v288_v63  ;;  %v705_v10 = vpack.c.bf16 %v291_v9, %v290_v8  ;;  %v44_v58 = vld [vmem:[#allocation2 + $0x20] sm:$0xff]  ;;  %v47_v60 = vld [vmem:[#allocation2 + $0x38] sm:$0xff]  ;;  %v78_v63 = vld [vmem:[#allocation2 + $0x130] sm:$0xff] }
  0x37   :  { %738 = vmatpush1.bf16.msra.mxu1 %v681_v32  ;;  %683 = vmatprep.subr.bf16.mxu0 %v837_v1  ;;  %v708_v18 = vpack.c.bf16 %v293_v15, %v292_v11  ;;  %v711_v23 = vpack.c.bf16 %v295_v21, %v294_v19  ;;  %v714_v29 = vpack.c.bf16 %v297_v25, %v296_v24  ;;  %v299_v32 = vld [vmem:[#allocation5 + $0xf8] sm:$0xff]  ;;  %v106_v49 = vadd.s32 8, %v885_v3  ;;  %v49_v0 = vld [vmem:[#allocation2 + $0x48] sm:$0xff]  ;;  %v80_v8 = vld [vmem:[#allocation2 + $0x140] sm:$0xff] }
  0x38   :  { %723 = vmatprep.subr.bf16.mxu1 %v837_v1  ;;  %v717_v33 = vpack.c.bf16 %v299_v32, %v298_v30  ;;  %vm639_vm11 = vcmp.ne.s32.totalorder %v885_v3, %v883_v2  ;;  %v123_v52 = vadd.s32 144, %v885_v3  ;;  %v107_v54 = vadd.s32 16, %v885_v3  ;;  %v79_v61 = vld [vmem:[#allocation2 + $0x138] sm:$0xff]  ;;  %v82_v11 = vld [vmem:[#allocation2 + $0x150] sm:$0xff]  ;;  %v53_v15 = vld [vmem:[#allocation2 + $0x68] sm:$0xff] }
  0x39   :  { %vm640_vm14 = vcmp.ne.s32.totalorder %v106_v49, %v883_v2  ;;  %v124_v57 = vadd.s32 152, %v885_v3  ;;  %v51_v9 = vld [vmem:[#allocation2 + $0x58] sm:$0xff]  ;;  %v52_v6 = vld [vmem:[#allocation2 + $0x60] sm:$0xff]  ;;  %v54_v13 = vld [vmem:[#allocation2 + $0x70] sm:$0xff] }
  0x3a   :  { %685 = vmatpush1.bf16.msra.mxu0 %v684_v35  ;;  %vm657_vm12 = vcmp.ne.s32.totalorder %v123_v52, %v888_v4  ;;  %v84_v12 = vld [vmem:[#allocation2 + $0x160] sm:$0xff]  ;;  %v55_v19 = vld [vmem:[#allocation2 + $0x78] sm:$0xff]  ;;  %v86_v14 = vld [vmem:[#allocation2 + $0x170] sm:$0xff] }
  0x3b   :  { %739 = vmatpush1.bf16.msra.mxu1 %v684_v35  ;;  %686 = vmatprep.subr.bf16.mxu0 %v837_v1  ;;  %v122_v35 = vadd.s32 136, %v885_v3  ;;  %v81_v3 = vld [vmem:[#allocation2 + $0x148] sm:$0xff]  ;;  %v87_v21 = vld [vmem:[#allocation2 + $0x178] sm:$0xff]  ;;  %v56_v16 = vld [vmem:[#allocation2 + $0x80] sm:$0xff] }
  0x3c   :  { %724 = vmatprep.subr.bf16.mxu1 %v837_v1  ;;  %v89_v24 = vld [vmem:[#allocation2 + $0x188] sm:$0xff]  ;;  %v88_v17 = vld [vmem:[#allocation2 + $0x180] sm:$0xff]  ;;  %v59_v25 = vld [vmem:[#allocation2 + $0x98] sm:$0xff] }
  0x3d   :  { %vm656_vm10 = vcmp.ne.s32.totalorder %v122_v35, %v888_v4  ;;  %v58_v20 = vld [vmem:[#allocation2 + $0x90] sm:$0xff]  ;;  %v61_v30 = vld [vmem:[#allocation2 + $0xa8] sm:$0xff]  ;;  %v60_v26 = vld [vmem:[#allocation2 + $0xa0] sm:$0xff] }
  0x3e   :  { %688 = vmatpush1.bf16.msra.mxu0 %v687_v50  ;;  %v90_v22 = vld [vmem:[#allocation2 + $0x190] sm:$0xff]  ;;  %v93_v32 = vld [vmem:[#allocation2 + $0x1a8] sm:$0xff]  ;;  %v95_v35 = vld [vmem:[#allocation2 + $0x1b8] sm:$0xff] }
  0x3f   :  { %740 = vmatpush1.bf16.msra.mxu1 %v687_v50  ;;  %689 = vmatprep.subr.bf16.mxu0 %v837_v1  ;;  %v43_v50 = vld [vmem:[#allocation2 + $0x18] sm:$0xff]  ;;  %v96_v37 = vld [vmem:[#allocation2 + $0x1c0] sm:$0xff]  ;;  %v66_v38 = vld [vmem:[#allocation2 + $0xd0] sm:$0xff] }
  0x40   :  { %725 = vmatprep.subr.bf16.mxu1 %v837_v1  ;;  %v67_v49 = vld [vmem:[#allocation2 + $0xd8] sm:$0xff]  ;;  %v101_v52 = vld [vmem:[#allocation2 + $0x1e8] sm:$0xff] }
  0x42   :  { %691 = vmatpush1.bf16.msra.mxu0 %v690_v53 }
  0x43   :  { %741 = vmatpush1.bf16.msra.mxu1 %v690_v53  ;;  %692 = vmatprep.subr.bf16.mxu0 %v837_v1  ;;  %v74_v53 = vld [vmem:[#allocation2 + $0x110] sm:$0xff] }
  0x44   :  { %726 = vmatprep.subr.bf16.mxu1 %v837_v1 }
  0x46   :  { %694 = vmatpush1.bf16.msra.mxu0 %v693_v56 }
  0x47   :  { %742 = vmatpush1.bf16.msra.mxu1 %v693_v56  ;;  %695 = vmatprep.subr.bf16.mxu0 %v837_v1  ;;  %v77_v56 = vld [vmem:[#allocation2 + $0x128] sm:$0xff] }
  0x48   :  { %727 = vmatprep.subr.bf16.mxu1 %v837_v1 }
  0x4a   :  { %697 = vmatpush1.bf16.msra.mxu0 %v696_v59 }
  0x4b   :  { %743 = vmatpush1.bf16.msra.mxu1 %v696_v59  ;;  %698 = vmatprep.subr.bf16.mxu0 %v837_v1  ;;  %v76_v59 = vld [vmem:[#allocation2 + $0x120] sm:$0xff] }
  0x4c   :  { %728 = vmatprep.subr.bf16.mxu1 %v837_v1 }
  0x4e   :  { %700 = vmatpush1.bf16.msra.mxu0 %v699_v62 }
  0x4f   :  { %744 = vmatpush1.bf16.msra.mxu1 %v699_v62  ;;  %701 = vmatprep.subr.bf16.mxu0 %v837_v1  ;;  %v46_v62 = vld [vmem:[#allocation2 + $0x30] sm:$0xff] }
  0x50   :  { %729 = vmatprep.subr.bf16.mxu1 %v837_v1 }
  0x52   :  { %703 = vmatpush1.bf16.msra.mxu0 %v702_v7 }
  0x53   :  { %745 = vmatpush1.bf16.msra.mxu1 %v702_v7  ;;  %704 = vmatprep.subr.bf16.mxu0 %v837_v1  ;;  %v48_v7 = vld [vmem:[#allocation2 + $0x40] sm:$0xff] }
  0x54   :  { %730 = vmatprep.subr.bf16.mxu1 %v837_v1 }
  0x56   :  { %706 = vmatpush1.bf16.msra.mxu0 %v705_v10 }
  0x57   :  { %746 = vmatpush1.bf16.msra.mxu1 %v705_v10  ;;  %707 = vmatprep.subr.bf16.mxu0 %v837_v1  ;;  %v83_v10 = vld [vmem:[#allocation2 + $0x158] sm:$0xff] }
  0x58   :  { %731 = vmatprep.subr.bf16.mxu1 %v837_v1 }
  0x5a   :  { %709 = vmatpush1.bf16.msra.mxu0 %v708_v18 }
  0x5b   :  { %747 = vmatpush1.bf16.msra.mxu1 %v708_v18  ;;  %710 = vmatprep.subr.bf16.mxu0 %v837_v1  ;;  %v85_v18 = vld [vmem:[#allocation2 + $0x168] sm:$0xff] }
  0x5c   :  { %732 = vmatprep.subr.bf16.mxu1 %v837_v1 }
  0x5e   :  { %712 = vmatpush1.bf16.msra.mxu0 %v711_v23 }
  0x5f   :  { %748 = vmatpush1.bf16.msra.mxu1 %v711_v23  ;;  %713 = vmatprep.subr.bf16.mxu0 %v837_v1  ;;  %v57_v23 = vld [vmem:[#allocation2 + $0x88] sm:$0xff] }
  0x60   :  { %733 = vmatprep.subr.bf16.mxu1 %v837_v1 }
  0x62   :  { %715 = vmatpush1.bf16.msra.mxu0 %v714_v29 }
  0x63   :  { %749 = vmatpush1.bf16.msra.mxu1 %v714_v29  ;;  %716 = vmatprep.subr.bf16.mxu0 %v837_v1  ;;  %v91_v29 = vld [vmem:[#allocation2 + $0x198] sm:$0xff] }
  0x64   :  { %734 = vmatprep.subr.bf16.mxu1 %v837_v1  ;;  %v42_v1 = vld [vmem:[#allocation2 + $0x10] sm:$0xff] }
  0x66   :  { %718 = vmatpush1.bf16.msra.mxu0 %v717_v33 }
  0x67   :  { %750 = vmatpush1.bf16.msra.mxu1 %v717_v33  ;;  %v63_v33 = vld [vmem:[#allocation2 + $0xb8] sm:$0xff] }
  0x69   :  { %576 = vmatmul.mubr.msk.f32.vlgmr.msra.gmra.mrb[0].mxu0 %vm639_vm11, %v40_v36  ;;  %vm641_vm11 = vcmp.ne.s32.totalorder %v107_v54, %v883_v2  ;;  %v65_v36 = vld [vmem:[#allocation2 + $0xc8] sm:$0xff] }
  0x6a   :  { %445 = vmatmul.mubr.f32.vlgmr.msra.gmra.mrb[0].mxu1 %v72_v48  ;;  %369 = vmatprep.mubr.f32.mxu0 %v43_v50  ;;  %v97_v48 = vld [vmem:[#allocation2 + $0x1c8] sm:$0xff]  ;;  %v99_v50 = vld [vmem:[#allocation2 + $0x1d8] sm:$0xff] }
  0x6b   :  { %610 = vmatprep.mubr.msk.f32.mxu1 %vm656_vm10, %v75_v51  ;;  %vm658_vm10 = vcmp.ne.s32.totalorder %v124_v57, %v888_v4  ;;  %v69_v51 = vld [vmem:[#allocation2 + $0xe8] sm:$0xff] }
  0x6d   :  { %578 = vmatmul.mubr.msk.f32.gmra.mrb[2].mxu0 %vm640_vm14, %v42_v1  ;;  %v71_v1 = vld [vmem:[#allocation2 + $0xf8] sm:$0xff]  ;;  %vm1165_vm14 = vcmp.ne.s32.totalorder %v1012_v46, %v888_v4 }
  0x6e   :  { %450 = vmatmul.mubr.f32.gmra.mrb[2].mxu1 %v74_v53  ;;  %374 = vmatprep.mubr.f32.mxu0 %v45_v55  ;;  %v103_v53 = vld [vmem:[#allocation2 + $0x1f8] sm:$0xff] }
  0x6f   :  { %612 = vmatprep.mubr.msk.f32.mxu1 %vm657_vm12, %v77_v56 }
  0x71   :  { %580 = vmatmul.mubr.msk.f32.gmra.mrb[4].mxu0 %vm641_vm11, %v44_v58 }
  0x72   :  { %455 = vmatmul.mubr.f32.gmra.mrb[4].mxu1 %v76_v59  ;;  %379 = vmatprep.mubr.f32.mxu0 %v47_v60 }
  0x73   :  { %614 = vmatprep.mubr.msk.f32.mxu1 %vm658_vm10, %v79_v61 }
  0x75   :  { %582 = vmatmul.mubr.msk.f32.gmra.mrb[6].mxu0 %vm642_vm0, %v46_v62  ;;  %vm1154_vm0 = vcmp.ne.s32.totalorder %v940_v27, %v883_v2  ;;  %v92_v27 = vld [vmem:[#allocation2 + $0x1a0] sm:$0xff] }
  0x76   :  { %460 = vmatmul.mubr.f32.gmra.mrb[6].mxu1 %v78_v63  ;;  %384 = vmatprep.mubr.f32.mxu0 %v49_v0 }
  0x77   :  { %616 = vmatprep.mubr.msk.f32.mxu1 %vm659_vm1, %v81_v3  ;;  %vm1155_vm1 = vcmp.ne.s32.totalorder %v943_v28, %v888_v4  ;;  %v62_v28 = vld [vmem:[#allocation2 + $0xb0] sm:$0xff] }
  0x79   :  { %584 = vmatmul.mubr.msk.f32.gmra.mrb[8].mxu0 %vm643_vm2, %v48_v7  ;;  %vm1156_vm2 = vcmp.ne.s32.totalorder %v950_v31, %v883_v2  ;;  %v94_v31 = vld [vmem:[#allocation2 + $0x1b0] sm:$0xff] }
  0x7a   :  { %465 = vmatmul.mubr.f32.gmra.mrb[8].mxu1 %v80_v8  ;;  %389 = vmatprep.mubr.f32.mxu0 %v51_v9 }
  0x7b   :  { %618 = vmatprep.mubr.msk.f32.mxu1 %vm660_vm3, %v83_v10  ;;  %vm1157_vm3 = vcmp.ne.s32.totalorder %v962_v34, %v888_v4  ;;  %v64_v34 = vld [vmem:[#allocation2 + $0xc0] sm:$0xff] }
  0x7d   :  { %586 = vmatmul.mubr.msk.f32.gmra.mrb[10].mxu0 %vm644_vm4, %v50_v5  ;;  %vm1158_vm4 = vcmp.ne.s32.totalorder %v971_v39, %v883_v2  ;;  %v98_v39 = vld [vmem:[#allocation2 + $0x1d0] sm:$0xff] }
  0x7e   :  { %470 = vmatmul.mubr.f32.gmra.mrb[10].mxu1 %v82_v11  ;;  %394 = vmatprep.mubr.f32.mxu0 %v53_v15 }
  0x7f   :  { %620 = vmatprep.mubr.msk.f32.mxu1 %vm661_vm5, %v85_v18  ;;  %vm1159_vm5 = vcmp.ne.s32.totalorder %v978_v40, %v888_v4  ;;  %v68_v40 = vld [vmem:[#allocation2 + $0xe0] sm:$0xff] }
  0x81   :  { %588 = vmatmul.mubr.msk.f32.gmra.mrb[12].mxu0 %vm645_vm6, %v52_v6  ;;  %vm1160_vm6 = vcmp.ne.s32.totalorder %v981_v41, %v883_v2  ;;  %v100_v41 = vld [vmem:[#allocation2 + $0x1e0] sm:$0xff] }
  0x82   :  { %475 = vmatmul.mubr.f32.gmra.mrb[12].mxu1 %v84_v12  ;;  %399 = vmatprep.mubr.f32.mxu0 %v55_v19 }
  0x83   :  { %622 = vmatprep.mubr.msk.f32.mxu1 %vm662_vm7, %v87_v21  ;;  %vm1161_vm7 = vcmp.ne.s32.totalorder %v984_v42, %v888_v4  ;;  %v70_v42 = vld [vmem:[#allocation2 + $0xf0] sm:$0xff] }
  0x85   :  { %590 = vmatmul.mubr.msk.f32.gmra.mrb[14].mxu0 %vm646_vm8, %v54_v13  ;;  %vm1162_vm8 = vcmp.ne.s32.totalorder %v995_v43, %v883_v2  ;;  %v102_v43 = vld [vmem:[#allocation2 + $0x1f0] sm:$0xff] }
  0x86   :  { %480 = vmatmul.mubr.f32.gmra.mrb[14].mxu1 %v86_v14  ;;  %404 = vmatprep.mubr.f32.mxu0 %v57_v23 }
  0x87   :  { %624 = vmatprep.mubr.msk.f32.mxu1 %vm663_vm9, %v89_v24  ;;  %vm1163_vm9 = vcmp.ne.s32.totalorder %v1004_v44, %v888_v4 }
  0x89   :  { %592 = vmatmul.mubr.msk.f32.gmra.mrb[16].mxu0 %vm1154_vm0, %v56_v16 }
  0x8a   :  { %485 = vmatmul.mubr.f32.gmra.mrb[16].mxu1 %v88_v17  ;;  %409 = vmatprep.mubr.f32.mxu0 %v59_v25 }
  0x8b   :  { %626 = vmatprep.mubr.msk.f32.mxu1 %vm1155_vm1, %v91_v29 }
  0x8d   :  { %594 = vmatmul.mubr.msk.f32.gmra.mrb[18].mxu0 %vm1156_vm2, %v58_v20 }
  0x8e   :  { %490 = vmatmul.mubr.f32.gmra.mrb[18].mxu1 %v90_v22  ;;  %414 = vmatprep.mubr.f32.mxu0 %v61_v30 }
  0x8f   :  { %628 = vmatprep.mubr.msk.f32.mxu1 %vm1157_vm3, %v93_v32 }
  0x91   :  { %596 = vmatmul.mubr.msk.f32.gmra.mrb[20].mxu0 %vm649_vm15, %v60_v26  ;;  %vm1166_vm15 = vcmp.ne.s32.totalorder %v1015_v47, %v883_v2 }
  0x92   :  { %495 = vmatmul.mubr.f32.gmra.mrb[20].mxu1 %v92_v27  ;;  %419 = vmatprep.mubr.f32.mxu0 %v63_v33 }
  0x93   :  { %630 = vmatprep.mubr.msk.f32.mxu1 %vm666_vm13, %v95_v35  ;;  %vm1164_vm13 = vcmp.ne.s32.totalorder %v1009_v45, %v883_v2 }
  0x95   :  { %598 = vmatmul.mubr.msk.f32.gmra.mrb[22].mxu0 %vm1158_vm4, %v62_v28 }
  0x96   :  { %500 = vmatmul.mubr.f32.gmra.mrb[22].mxu1 %v94_v31  ;;  %424 = vmatprep.mubr.f32.mxu0 %v65_v36 }
  0x97   :  { %632 = vmatprep.mubr.msk.f32.mxu1 %vm1159_vm5, %v97_v48 }
  0x99   :  { %600 = vmatmul.mubr.msk.f32.gmra.mrb[24].mxu0 %vm1160_vm6, %v64_v34 }
  0x9a   :  { %505 = vmatmul.mubr.f32.gmra.mrb[24].mxu1 %v96_v37  ;;  %429 = vmatprep.mubr.f32.mxu0 %v67_v49 }
  0x9b   :  { %634 = vmatprep.mubr.msk.f32.mxu1 %vm1161_vm7, %v99_v50 }
  0x9d   :  { %602 = vmatmul.mubr.msk.f32.gmra.mrb[26].mxu0 %vm1162_vm8, %v66_v38 }
  0x9e   :  { %510 = vmatmul.mubr.f32.gmra.mrb[26].mxu1 %v98_v39  ;;  %434 = vmatprep.mubr.f32.mxu0 %v69_v51 }
  0x9f   :  { %636 = vmatprep.mubr.msk.f32.mxu1 %vm1163_vm9, %v101_v52 }
  0xa1   :  { %604 = vmatmul.mubr.msk.f32.gmra.mrb[28].mxu0 %vm1164_vm13, %v68_v40 }
  0xa2   :  { %515 = vmatmul.mubr.f32.gmra.mrb[28].mxu1 %v100_v41  ;;  %439 = vmatprep.mubr.f32.mxu0 %v71_v1 }
  0xa3   :  { %638 = vmatprep.mubr.msk.f32.mxu1 %vm1165_vm14, %v103_v53 }
  0xa5   :  { %606 = vmatmul.mubr.msk.f32.gmra.mrb[30].mxu0 %vm1166_vm15, %v70_v42 }
  0xa6   :  { %520 = vmatmul.mubr.f32.gmra.mrb[30].mxu1 %v102_v43 }
 0x13c   :  { %v366_v44 = vpop.f32.mrb[0].mxu0 }
 0x13d   :  { %v446_v54 = vpop.f32.mrb[0].mxu1  ;;  %525 = vst [vmem:[#allocation7] sm:$0xff] %v366_v44  ;;  %v368_v55 = vpop.f32.mrb[1].mxu0 }
 0x13e   :  { %541 = vst [vmem:[#allocation7 + $0x80] sm:$0xff] %v446_v54  ;;  %v448_v45 = vpop.f32.mrb[1].mxu1 }
 0x140   :  { %v371_v56 = vpop.f32.mrb[2].mxu0 }
 0x141   :  { %v451_v57 = vpop.f32.mrb[2].mxu1  ;;  %526 = vst [vmem:[#allocation7 + $0x8] sm:$0xff] %v371_v56  ;;  %v373_v58 = vpop.f32.mrb[3].mxu0 }
 0x142   :  { %542 = vst [vmem:[#allocation7 + $0x88] sm:$0xff] %v451_v57  ;;  %v453_v4 = vpop.f32.mrb[3].mxu1 }
 0x144   :  { %v376_v46 = vpop.f32.mrb[4].mxu0 }
 0x145   :  { %v456_v59 = vpop.f32.mrb[4].mxu1  ;;  %527 = vst [vmem:[#allocation7 + $0x10] sm:$0xff] %v376_v46  ;;  %v378_v60 = vpop.f32.mrb[5].mxu0 }
 0x146   :  { %543 = vst [vmem:[#allocation7 + $0x90] sm:$0xff] %v456_v59  ;;  %v458_v2 = vpop.f32.mrb[5].mxu1 }
 0x148   :  { %v381_v47 = vpop.f32.mrb[6].mxu0 }
 0x149   :  { %v461_v61 = vpop.f32.mrb[6].mxu1  ;;  %528 = vst [vmem:[#allocation7 + $0x18] sm:$0xff] %v381_v47  ;;  %v383_v62 = vpop.f32.mrb[7].mxu0 }
 0x14a   :  { %544 = vst [vmem:[#allocation7 + $0x98] sm:$0xff] %v461_v61  ;;  %v463_v63 = vpop.f32.mrb[7].mxu1 }
 0x14c   :  { %v386_v0 = vpop.f32.mrb[8].mxu0 }
 0x14d   :  { %v466_v3 = vpop.f32.mrb[8].mxu1  ;;  %529 = vst [vmem:[#allocation7 + $0x20] sm:$0xff] %v386_v0  ;;  %v388_v7 = vpop.f32.mrb[9].mxu0 }
 0x14e   :  { %545 = vst [vmem:[#allocation7 + $0xa0] sm:$0xff] %v466_v3  ;;  %v468_v8 = vpop.f32.mrb[9].mxu1 }
 0x150   :  { %v391_v9 = vpop.f32.mrb[10].mxu0 }
 0x151   :  { %v471_v10 = vpop.f32.mrb[10].mxu1  ;;  %530 = vst [vmem:[#allocation7 + $0x28] sm:$0xff] %v391_v9  ;;  %v393_v5 = vpop.f32.mrb[11].mxu0 }
 0x152   :  { %546 = vst [vmem:[#allocation7 + $0xa8] sm:$0xff] %v471_v10  ;;  %v473_v11 = vpop.f32.mrb[11].mxu1 }
 0x154   :  { %v396_v15 = vpop.f32.mrb[12].mxu0 }
 0x155   :  { %v476_v18 = vpop.f32.mrb[12].mxu1  ;;  %531 = vst [vmem:[#allocation7 + $0x30] sm:$0xff] %v396_v15  ;;  %v398_v6 = vpop.f32.mrb[13].mxu0 }
 0x156   :  { %547 = vst [vmem:[#allocation7 + $0xb0] sm:$0xff] %v476_v18  ;;  %v478_v12 = vpop.f32.mrb[13].mxu1 }
 0x158   :  { %v401_v19 = vpop.f32.mrb[14].mxu0 }
 0x159   :  { %v481_v21 = vpop.f32.mrb[14].mxu1  ;;  %532 = vst [vmem:[#allocation7 + $0x38] sm:$0xff] %v401_v19  ;;  %v403_v13 = vpop.f32.mrb[15].mxu0 }
 0x15a   :  { %548 = vst [vmem:[#allocation7 + $0xb8] sm:$0xff] %v481_v21  ;;  %v483_v14 = vpop.f32.mrb[15].mxu1 }
 0x15c   :  { %v406_v23 = vpop.f32.mrb[16].mxu0 }
 0x15d   :  { %v486_v24 = vpop.f32.mrb[16].mxu1  ;;  %533 = vst [vmem:[#allocation7 + $0x40] sm:$0xff] %v406_v23  ;;  %v408_v16 = vpop.f32.mrb[17].mxu0 }
 0x15e   :  { %549 = vst [vmem:[#allocation7 + $0xc0] sm:$0xff] %v486_v24  ;;  %v488_v17 = vpop.f32.mrb[17].mxu1 }
 0x160   :  { %v411_v25 = vpop.f32.mrb[18].mxu0 }
 0x161   :  { %v491_v29 = vpop.f32.mrb[18].mxu1  ;;  %534 = vst [vmem:[#allocation7 + $0x48] sm:$0xff] %v411_v25  ;;  %v413_v20 = vpop.f32.mrb[19].mxu0 }
 0x162   :  { %550 = vst [vmem:[#allocation7 + $0xc8] sm:$0xff] %v491_v29  ;;  %v493_v22 = vpop.f32.mrb[19].mxu1 }
 0x164   :  { %v416_v30 = vpop.f32.mrb[20].mxu0 }
 0x165   :  { %v496_v32 = vpop.f32.mrb[20].mxu1  ;;  %535 = vst [vmem:[#allocation7 + $0x50] sm:$0xff] %v416_v30  ;;  %v418_v26 = vpop.f32.mrb[21].mxu0 }
 0x166   :  { %551 = vst [vmem:[#allocation7 + $0xd0] sm:$0xff] %v496_v32  ;;  %v498_v27 = vpop.f32.mrb[21].mxu1 }
 0x168   :  { %v421_v33 = vpop.f32.mrb[22].mxu0 }
 0x169   :  { %v501_v35 = vpop.f32.mrb[22].mxu1  ;;  %536 = vst [vmem:[#allocation7 + $0x58] sm:$0xff] %v421_v33  ;;  %v423_v28 = vpop.f32.mrb[23].mxu0 }
 0x16a   :  { %552 = vst [vmem:[#allocation7 + $0xd8] sm:$0xff] %v501_v35  ;;  %v503_v31 = vpop.f32.mrb[23].mxu1 }
 0x16c   :  { %v426_v36 = vpop.f32.mrb[24].mxu0 }
 0x16d   :  { %v506_v48 = vpop.f32.mrb[24].mxu1  ;;  %537 = vst [vmem:[#allocation7 + $0x60] sm:$0xff] %v426_v36  ;;  %v428_v34 = vpop.f32.mrb[25].mxu0 }
 0x16e   :  { %553 = vst [vmem:[#allocation7 + $0xe0] sm:$0xff] %v506_v48  ;;  %v508_v37 = vpop.f32.mrb[25].mxu1 }
 0x170   :  { %v431_v49 = vpop.f32.mrb[26].mxu0 }
 0x171   :  { %v511_v50 = vpop.f32.mrb[26].mxu1  ;;  %538 = vst [vmem:[#allocation7 + $0x68] sm:$0xff] %v431_v49  ;;  %v433_v38 = vpop.f32.mrb[27].mxu0 }
 0x172   :  { %554 = vst [vmem:[#allocation7 + $0xe8] sm:$0xff] %v511_v50  ;;  %v513_v39 = vpop.f32.mrb[27].mxu1 }
 0x174   :  { %v436_v51 = vpop.f32.mrb[28].mxu0 }
 0x175   :  { %v516_v52 = vpop.f32.mrb[28].mxu1  ;;  %539 = vst [vmem:[#allocation7 + $0x70] sm:$0xff] %v436_v51  ;;  %v438_v40 = vpop.f32.mrb[29].mxu0 }
 0x176   :  { %555 = vst [vmem:[#allocation7 + $0xf0] sm:$0xff] %v516_v52  ;;  %v518_v41 = vpop.f32.mrb[29].mxu1 }
 0x178   :  { %v441_v1 = vpop.f32.mrb[30].mxu0 }
 0x179   :  { %v521_v53 = vpop.f32.mrb[30].mxu1  ;;  %540 = vst [vmem:[#allocation7 + $0x78] sm:$0xff] %v441_v1  ;;  %v443_v42 = vpop.f32.mrb[31].mxu0 }
 0x17a   :  { %556 = vst [vmem:[#allocation7 + $0xf8] sm:$0xff] %v521_v53  ;;  %v523_v43 = vpop.f32.mrb[31].mxu1 }
 0x17b   :  { %814 = shalt.err (!%p811_p6)
}
 0x17c   :  { %s815_s12 = scalar_lea.hbm %s1153_s2, 4096 }
 0x17d   :  { %p816_p7 = scmp.ne.s32.totalorder %s1153_s2, %s815_s12  ;;  %p819_p8 = scmp.lt.u32.totalorder %s815_s12, %s1153_s2 }
 0x17f   :  { %p821_p9 = pnand %p819_p8, %p816_p7 }
 0x181   :  { %824 = shalt.err (!%p821_p9)
}
 0x182   :  { %568 = dma.vmem_to_hbm [thread:$0]  %s563_s8, 4096, %s1153_s2, [#allocation4], %s835_s0, %s835_s0, %s836_s5  }
 0x183   :  { %829 = dma.done.wait [#allocation4], 4096  }
 0x184   :  { %830 = vsyncadd [#allocation4], 4294963200 }
 0x185   :  { %572 = vsyncpa [#allocation3], 1 }
 0x186   :  { %573 = vsyncpa [#allocation6], 1 }
 0x187   :  { %574 = vsyncpa [#allocation4], 1 }

</bundles_post_ra>
